<compile_context>
chip_gen: v7x
topology: tpu7x:2x2x1
jax: 0.10.0
libtpu: 0.0.40
codegen_flags: <defaults>
</compile_context>

<pallas_src>
import functools

import jax
import jax.numpy as jnp
from jax.experimental import pallas as pl
from jax.experimental.pallas import tpu as pltpu


def ppo_con_kernel(x_ref, w1_ref, b1_ref, w2_ref, b2_ref, wh_ref, bh_ref,
                   out_ref, *, output_dim):
    x = x_ref[...]

    # base: Linear -> ReLU -> Linear -> ReLU (MXU matmuls, f32 accumulation,
    # f32 elementwise).
    h = jnp.dot(x, w1_ref[...], preferred_element_type=jnp.float32) + b1_ref[...]
    h = jnp.maximum(h, 0.0)
    h = jnp.dot(h.astype(w2_ref.dtype), w2_ref[...],
                preferred_element_type=jnp.float32) + b2_ref[...]
    h = jnp.maximum(h, 0.0)

    # Fused heads: one matmul against the padded [hidden, 128] slab.
    # Lanes [0, output_dim)              -> mean (no clamp)
    # Lanes [output_dim, 2*output_dim)   -> log_std (clamped to [-2, 2])
    # Remaining lanes are zero padding (clamp is a no-op there).
    y = jnp.dot(h.astype(wh_ref.dtype), wh_ref[...],
                preferred_element_type=jnp.float32) + bh_ref[...]
    lane = jax.lax.broadcasted_iota(jnp.int32, y.shape, 1)
    y = jnp.where(lane < output_dim, y, jnp.clip(y, -2.0, 2.0))

    out_ref[...] = y.astype(out_ref.dtype)


def ppo_con_forward(x, params, *, compute_dtype=jnp.bfloat16, max_batch_tile=512):
    """x: [B, input_dim] float32. params: dict of f32 weights/biases.

    Weights are stored [in_features, out_features]; biases are [1, out_features].
    Returns (mean, log_std), both [B, output_dim] float32.
    """
    B, input_dim = x.shape
    hidden_dim = params["w1"].shape[1]
    output_dim = params["wm"].shape[1]

    # Lane-dense fused head: pad to at least 128 lanes.
    head_pad = max(128, ((2 * output_dim + 127) // 128) * 128)
    w_head = jnp.zeros((hidden_dim, head_pad), jnp.float32)
    w_head = w_head.at[:, :output_dim].set(params["wm"])
    w_head = w_head.at[:, output_dim:2 * output_dim].set(params["ws"])
    b_head = jnp.zeros((1, head_pad), jnp.float32)
    b_head = b_head.at[:, :output_dim].set(params["bm"])
    b_head = b_head.at[:, output_dim:2 * output_dim].set(params["bs"])

    # One grid step for small batches; cap rows/step for very large batches so
    # v7x megacore still has multiple parallel tiles.
    batch_tile = B if B <= max_batch_tile else max_batch_tile
    assert B % batch_tile == 0, "batch must be divisible by batch_tile"
    grid = (B // batch_tile,)

    # bf16 matmul operands (halved DMA bytes, full-rate MXU on v6e/v7x);
    # biases stay f32 and are added after f32 accumulation.
    x_c = x.astype(compute_dtype)
    w1 = params["w1"].astype(compute_dtype)
    w2 = params["w2"].astype(compute_dtype)
    wh = w_head.astype(compute_dtype)
    b1 = params["b1"].astype(jnp.float32)
    b2 = params["b2"].astype(jnp.float32)
    bh = b_head.astype(jnp.float32)

    kernel = functools.partial(ppo_con_kernel, output_dim=output_dim)

    fused = pl.pallas_call(
        kernel,
        out_shape=jax.ShapeDtypeStruct((B, head_pad), jnp.float32),
        grid_spec=pl.GridSpec(
            grid=grid,
            in_specs=[
                pl.BlockSpec((batch_tile, input_dim), lambda i: (i, 0)),   # x
                pl.BlockSpec((input_dim, hidden_dim), lambda i: (0, 0)),   # w1
                pl.BlockSpec((1, hidden_dim), lambda i: (0, 0)),           # b1
                pl.BlockSpec((hidden_dim, hidden_dim), lambda i: (0, 0)),  # w2
                pl.BlockSpec((1, hidden_dim), lambda i: (0, 0)),           # b2
                pl.BlockSpec((hidden_dim, head_pad), lambda i: (0, 0)),    # fused head W
                pl.BlockSpec((1, head_pad), lambda i: (0, 0)),             # fused head b
            ],
            out_specs=pl.BlockSpec((batch_tile, head_pad), lambda i: (i, 0)),
        ),
        compiler_params=pltpu.CompilerParams(
            dimension_semantics=("parallel",),
        ),
    )(x_c, w1, b1, w2, b2, wh, bh)

    mean = fused[:, :output_dim]
    log_std = fused[:, output_dim:2 * output_dim]
    return mean, log_std


def init_params(key, input_dim, output_dim, hidden_dim):
    """Deterministic synthetic init (PyTorch-like uniform fan-in scaling)."""
    ks = jax.random.split(key, 8)

    def lin(kw, kb, fan_in, fan_out):
        bound = 1.0 / jnp.sqrt(fan_in)
        w = jax.random.uniform(kw, (fan_in, fan_out), jnp.float32, -bound, bound)
        b = jax.random.uniform(kb, (1, fan_out), jnp.float32, -bound, bound)
        return w, b

    w1, b1 = lin(ks[0], ks[1], input_dim, hidden_dim)
    w2, b2 = lin(ks[2], ks[3], hidden_dim, hidden_dim)
    wm, bm = lin(ks[4], ks[5], hidden_dim, output_dim)
    ws, bs = lin(ks[6], ks[7], hidden_dim, output_dim)
    return dict(w1=w1, b1=b1, w2=w2, b2=b2, wm=wm, bm=bm, ws=ws, bs=bs)


def ppo_con_ref(x, p, compute_dtype=jnp.bfloat16):
    """Pure-JAX reference with the same dtype choices as the kernel."""
    xd = x.astype(compute_dtype)
    w1 = p["w1"].astype(compute_dtype)
    w2 = p["w2"].astype(compute_dtype)
    wm = p["wm"].astype(compute_dtype)
    ws = p["ws"].astype(compute_dtype)

    h = jnp.maximum(
        jnp.dot(xd, w1, preferred_element_type=jnp.float32) + p["b1"], 0.0)
    h = jnp.maximum(
        jnp.dot(h.astype(compute_dtype), w2,
                preferred_element_type=jnp.float32) + p["b2"], 0.0)
    mean = jnp.dot(h.astype(compute_dtype), wm,
                   preferred_element_type=jnp.float32) + p["bm"]
    log_std = jnp.clip(
        jnp.dot(h.astype(compute_dtype), ws,
                preferred_element_type=jnp.float32) + p["bs"], -2.0, 2.0)
    return mean, log_std


if __name__ == "__main__":
    key = jax.random.PRNGKey(0)
    k_x, k_p = jax.random.split(key)

    batch, input_dim, hidden_dim, output_dim = 16, 16, 32, 4
    x = jax.random.normal(k_x, (batch, input_dim), jnp.float32)
    params = init_params(k_p, input_dim, output_dim, hidden_dim)

    mean, log_std = ppo_con_forward(x, params)
    jax.block_until_ready((mean, log_std))

    mean_ref, log_std_ref = ppo_con_ref(x, params)

    assert mean.shape == (batch, output_dim)
    assert log_std.shape == (batch, output_dim)
    assert jnp.allclose(mean, mean_ref, atol=1e-3, rtol=1e-3)
    assert jnp.allclose(log_std, log_std_ref, atol=1e-3, rtol=1e-3)
    assert jnp.all(log_std >= -2.0) and jnp.all(log_std <= 2.0)

    print("KERNEL_OK")
</pallas_src>

<mosaic_0001>
module attributes {stable_mosaic.version = 11 : i64} {
  func.func @ppo_con_kernel(%arg0: i32, %arg1: memref<16x16xbf16, #tpu.memory_space<vmem>>, %arg2: memref<16x32xbf16, #tpu.memory_space<vmem>>, %arg3: memref<1x32xf32, #tpu.memory_space<vmem>>, %arg4: memref<32x32xbf16, #tpu.memory_space<vmem>>, %arg5: memref<1x32xf32, #tpu.memory_space<vmem>>, %arg6: memref<32x128xbf16, #tpu.memory_space<vmem>>, %arg7: memref<1x128xf32, #tpu.memory_space<vmem>>, %arg8: memref<16x128xf32, #tpu.memory_space<vmem>>) attributes {dimension_semantics = [#tpu.dimension_semantics<parallel>], iteration_bounds = array<i64: 1>, scalar_prefetch = 0 : i64, scratch_operands = 0 : i64, tpu.core_type = #tpu.core_type<tc>, window_params = [{transform_indices = @transform_0, window_bounds = array<i64: 16, 16>}, {pipeline_mode = #tpu.pipeline_mode<synchronous>, transform_indices = @transform_1, window_bounds = array<i64: 16, 32>}, {pipeline_mode = #tpu.pipeline_mode<synchronous>, transform_indices = @transform_2, window_bounds = array<i64: 1, 32>}, {pipeline_mode = #tpu.pipeline_mode<synchronous>, transform_indices = @transform_3, window_bounds = array<i64: 32, 32>}, {pipeline_mode = #tpu.pipeline_mode<synchronous>, transform_indices = @transform_4, window_bounds = array<i64: 1, 32>}, {pipeline_mode = #tpu.pipeline_mode<synchronous>, transform_indices = @transform_5, window_bounds = array<i64: 32, 128>}, {pipeline_mode = #tpu.pipeline_mode<synchronous>, transform_indices = @transform_6, window_bounds = array<i64: 1, 128>}, {transform_indices = @transform_7, window_bounds = array<i64: 16, 128>}]} {
    %c0 = arith.constant 0 : index
    %c0_0 = arith.constant 0 : index
    %0 = vector.load %arg1[%c0, %c0_0] : memref<16x16xbf16, #tpu.memory_space<vmem>>, vector<16x16xbf16>
    %c0_1 = arith.constant 0 : index
    %c0_2 = arith.constant 0 : index
    %1 = vector.load %arg2[%c0_1, %c0_2] : memref<16x32xbf16, #tpu.memory_space<vmem>>, vector<16x32xbf16>
    %cst = arith.constant dense<0.000000e+00> : vector<16x32xf32>
    %2 = tpu.matmul %0, %1, %cst {dimension_numbers = #tpu.dot_dimension_numbers<[1], [0], [0], [1], [0, 0, 1, 1], [], []>} : vector<16x16xbf16>, vector<16x32xbf16>, vector<16x32xf32> -> vector<16x32xf32>
    %c0_3 = arith.constant 0 : index
    %c0_4 = arith.constant 0 : index
    %3 = vector.load %arg3[%c0_3, %c0_4] : memref<1x32xf32, #tpu.memory_space<vmem>>, vector<1x32xf32>
    %4 = vector.broadcast %3 : vector<1x32xf32> to vector<16x32xf32>
    %5 = arith.addf %2, %4 : vector<16x32xf32>
    %cst_5 = arith.constant 0.000000e+00 : f32
    %6 = vector.broadcast %cst_5 : f32 to vector<16x32xf32>
    %7 = arith.maximumf %5, %6 : vector<16x32xf32>
    %8 = arith.truncf %7 : vector<16x32xf32> to vector<16x32xbf16>
    %c0_6 = arith.constant 0 : index
    %c0_7 = arith.constant 0 : index
    %9 = vector.load %arg4[%c0_6, %c0_7] : memref<32x32xbf16, #tpu.memory_space<vmem>>, vector<32x32xbf16>
    %cst_8 = arith.constant dense<0.000000e+00> : vector<16x32xf32>
    %10 = tpu.matmul %8, %9, %cst_8 {dimension_numbers = #tpu.dot_dimension_numbers<[1], [0], [0], [1], [0, 0, 1, 1], [], []>} : vector<16x32xbf16>, vector<32x32xbf16>, vector<16x32xf32> -> vector<16x32xf32>
    %c0_9 = arith.constant 0 : index
    %c0_10 = arith.constant 0 : index
    %11 = vector.load %arg5[%c0_9, %c0_10] : memref<1x32xf32, #tpu.memory_space<vmem>>, vector<1x32xf32>
    %12 = vector.broadcast %11 : vector<1x32xf32> to vector<16x32xf32>
    %13 = arith.addf %10, %12 : vector<16x32xf32>
    %cst_11 = arith.constant 0.000000e+00 : f32
    %14 = vector.broadcast %cst_11 : f32 to vector<16x32xf32>
    %15 = arith.maximumf %13, %14 : vector<16x32xf32>
    %16 = arith.truncf %15 : vector<16x32xf32> to vector<16x32xbf16>
    %c0_12 = arith.constant 0 : index
    %c0_13 = arith.constant 0 : index
    %17 = vector.load %arg6[%c0_12, %c0_13] : memref<32x128xbf16, #tpu.memory_space<vmem>>, vector<32x128xbf16>
    %cst_14 = arith.constant dense<0.000000e+00> : vector<16x128xf32>
    %18 = tpu.matmul %16, %17, %cst_14 {dimension_numbers = #tpu.dot_dimension_numbers<[1], [0], [0], [1], [0, 0, 1, 1], [], []>} : vector<16x32xbf16>, vector<32x128xbf16>, vector<16x128xf32> -> vector<16x128xf32>
    %c0_15 = arith.constant 0 : index
    %c0_16 = arith.constant 0 : index
    %19 = vector.load %arg7[%c0_15, %c0_16] : memref<1x128xf32, #tpu.memory_space<vmem>>, vector<1x128xf32>
    %20 = vector.broadcast %19 : vector<1x128xf32> to vector<16x128xf32>
    %21 = arith.addf %18, %20 : vector<16x128xf32>
    %22 = tpu.iota {dimensions = array<i32: 1>} : vector<16x128xi32>
    %c4_i32 = arith.constant 4 : i32
    %23 = vector.broadcast %c4_i32 : i32 to vector<16x128xi32>
    %24 = arith.cmpi slt, %22, %23 : vector<16x128xi32>
    %cst_17 = arith.constant -2.000000e+00 : f32
    %cst_18 = arith.constant 2.000000e+00 : f32
    %25 = vector.broadcast %cst_17 : f32 to vector<16x128xf32>
    %26 = arith.maximumf %25, %21 : vector<16x128xf32>
    %27 = vector.broadcast %cst_18 : f32 to vector<16x128xf32>
    %28 = arith.minimumf %27, %26 : vector<16x128xf32>
    %29 = arith.select %24, %21, %28 : vector<16x128xi1>, vector<16x128xf32>
    %c0_19 = arith.constant 0 : index
    %c0_20 = arith.constant 0 : index
    %30 = vector.load %arg8[%c0_19, %c0_20] : memref<16x128xf32, #tpu.memory_space<vmem>>, vector<16x128xf32>
    tpu.vector_store %arg8[%c0_19, %c0_20], %29 {strides = array<i32>} : memref<16x128xf32, #tpu.memory_space<vmem>>, vector<16x128xf32>,
    return
  }
  func.func @transform_0(%arg0: i32) -> (i32, i32) {
    %c0_i32 = arith.constant 0 : i32
    %c0_i32_0 = arith.constant 0 : i32
    return %arg0, %c0_i32 : i32, i32
  }
  func.func @transform_1(%arg0: i32) -> (i32, i32) {
    %c0_i32 = arith.constant 0 : i32
    %c0_i32_0 = arith.constant 0 : i32
    %c0_i32_1 = arith.constant 0 : i32
    return %c0_i32, %c0_i32_0 : i32, i32
  }
  func.func @transform_2(%arg0: i32) -> (i32, i32) {
    %c0_i32 = arith.constant 0 : i32
    %c0_i32_0 = arith.constant 0 : i32
    %c0_i32_1 = arith.constant 0 : i32
    return %c0_i32, %c0_i32_0 : i32, i32
  }
  func.func @transform_3(%arg0: i32) -> (i32, i32) {
    %c0_i32 = arith.constant 0 : i32
    %c0_i32_0 = arith.constant 0 : i32
    %c0_i32_1 = arith.constant 0 : i32
    return %c0_i32, %c0_i32_0 : i32, i32
  }
  func.func @transform_4(%arg0: i32) -> (i32, i32) {
    %c0_i32 = arith.constant 0 : i32
    %c0_i32_0 = arith.constant 0 : i32
    %c0_i32_1 = arith.constant 0 : i32
    return %c0_i32, %c0_i32_0 : i32, i32
  }
  func.func @transform_5(%arg0: i32) -> (i32, i32) {
    %c0_i32 = arith.constant 0 : i32
    %c0_i32_0 = arith.constant 0 : i32
    %c0_i32_1 = arith.constant 0 : i32
    return %c0_i32, %c0_i32_0 : i32, i32
  }
  func.func @transform_6(%arg0: i32) -> (i32, i32) {
    %c0_i32 = arith.constant 0 : i32
    %c0_i32_0 = arith.constant 0 : i32
    %c0_i32_1 = arith.constant 0 : i32
    return %c0_i32, %c0_i32_0 : i32, i32
  }
  func.func @transform_7(%arg0: i32) -> (i32, i32) {
    %c0_i32 = arith.constant 0 : i32
    %c0_i32_0 = arith.constant 0 : i32
    return %arg0, %c0_i32 : i32, i32
  }
}

</mosaic_0001>

<bundles_post_ra>
// kernel: tpu_custom_call.1
= control target key start
LH: loop header
LB: loop body
LE: loop exit
PB: predicated region body
PF: predicated region fallthrough
CT: control target
= control target key end

     0   :  { %12 = vsyncpa [#allocation3], 0  ;;  %s591_s0 = inlined_call_operand.hbm [shape: bf16[16,16], index: 0, kind: input, shape index: {}]   ;;  %s592_s1 = inlined_call_operand.hbm [shape: bf16[16,32], index: 1, kind: input, shape index: {}]   ;;  %s593_s2 = inlined_call_operand.vmem [shape: f32[1,32], index: 2, kind: input, shape index: {}]   ;;  %s594_s3 = inlined_call_operand.hbm [shape: bf16[32,32], index: 3, kind: input, shape index: {}]   ;;  %s595_s4 = inlined_call_operand.vmem [shape: f32[1,32], index: 4, kind: input, shape index: {}]   ;;  %s596_s5 = inlined_call_operand.vmem [shape: bf16[32,128], index: 5, kind: input, shape index: {}]   ;;  %s597_s6 = inlined_call_operand.vmem [shape: f32[1,128], index: 6, kind: input, shape index: {}]   ;;  %s598_s7 = inlined_call_operand.hbm [shape: f32[16,128], index: 7, kind: output, shape index: {}]  }
   0x1   :  { %13 = vsyncpa [#allocation6], 0 }
   0x2   :  { %14 = vsyncpa [#allocation4], 0  ;;  %s460_s24 = smov [#allocation5]   ;;  %s461_s26 = smov [#allocation2]  }
   0x3   :  { %s32_s25 = sshll.u32 %s460_s24, 4  ;;  %s20_s27 = sshll.u32 %s461_s26, 4  ;;  %s33_s25 = int_to_ptr.vmem [resolvable:$true] %s32_s25  ;;  %s510_s27 = int_to_ptr.vmem [resolvable:$true] %s20_s27 }
   0x4   :  { %s366_s30 = scalar_lea.hbm %s592_s1, 128 }
   0x5   :  { %p367_p0 = scmp.ne.s32.totalorder %s592_s1, %s366_s30  ;;  %p370_p1 = scmp.lt.u32.totalorder %s366_s30, %s592_s1 }
   0x7   :  { %p372_p2 = pnand %p370_p1, %p367_p0 }
   0x9   :  { %375 = shalt.err (!%p372_p2)
}
   0xa   :  { %s376_s12 = scalar_lea.vmem %s33_s25, 128  ;;  %p381_p4 = scmp.lt.s32.totalorder %s33_s25, %s33_s25 }
   0xb   :  { %p377_p3 = scmp.ne.s32.totalorder %s33_s25, %s376_s12  ;;  %p382_p5 = scmp.lt.s32.totalorder %s376_s12, %s376_s12 }
   0xd   :  { %p383_p6 = por %p382_p5, %p381_p4 }
   0xf   :  { %p384_p7 = pnand %p383_p6, %p377_p3 }
  0x11   :  { %387 = shalt.err (!%p384_p7)
}
  0x12   :  { %s462_s13 = smov 64   ;;  %s463_s14 = smov 4  }
  0x13   :  { %38 = dma.hbm_to_vmem [thread:$0]  %s592_s1, 128, %s33_s25, [#allocation6], %s462_s13, %s462_s13, %s463_s14  }
  0x14   :  { %s388_s19 = scalar_lea.hbm %s591_s0, 128 }
  0x15   :  { %p389_p8 = scmp.ne.s32.totalorder %s591_s0, %s388_s19  ;;  %p392_p9 = scmp.lt.u32.totalorder %s388_s19, %s591_s0 }
  0x17   :  { %p394_p10 = pnand %p392_p9, %p389_p8 }
  0x19   :  { %397 = shalt.err (!%p394_p10)
}
  0x1a   :  { %s398_s24 = scalar_lea.vmem %s510_s27, 128  ;;  %p403_p12 = scmp.lt.s32.totalorder %s510_s27, %s510_s27 }
  0x1b   :  { %p399_p11 = scmp.ne.s32.totalorder %s510_s27, %s398_s24  ;;  %p404_p13 = scmp.lt.s32.totalorder %s398_s24, %s398_s24 }
  0x1d   :  { %p405_p0 = por %p404_p13, %p403_p12 }
  0x1f   :  { %p406_p1 = pnand %p405_p0, %p399_p11 }
  0x21   :  { %409 = shalt.err (!%p406_p1)
}
  0x22   :  { %26 = dma.hbm_to_vmem [thread:$0]  %s591_s0, 128, %s510_s27, [#allocation3], %s462_s13, %s462_s13, %s463_s14  }
  0x23   :  { %s464_s26 = smov [#allocation7]   ;;  %s410_s8 = scalar_lea.hbm %s594_s3, 256 }
  0x24   :  { %s46_s28 = sshll.u32 %s464_s26, 4  ;;  %p411_p2 = scmp.ne.s32.totalorder %s594_s3, %s410_s8  ;;  %s47_s28 = int_to_ptr.vmem [resolvable:$true] %s46_s28 }
  0x25   :  { %p414_p3 = scmp.lt.u32.totalorder %s410_s8, %s594_s3 }
  0x27   :  { %p416_p4 = pnand %p414_p3, %p411_p2 }
  0x29   :  { %419 = shalt.err (!%p416_p4)
}
  0x2a   :  { %s420_s15 = scalar_lea.vmem %s47_s28, 256  ;;  %p425_p6 = scmp.lt.s32.totalorder %s47_s28, %s47_s28 }
  0x2b   :  { %p421_p5 = scmp.ne.s32.totalorder %s47_s28, %s420_s15  ;;  %p426_p7 = scmp.lt.s32.totalorder %s420_s15, %s420_s15 }
  0x2d   :  { %p427_p8 = por %p426_p7, %p425_p6 }
  0x2f   :  { %p428_p9 = pnand %p427_p8, %p421_p5 }
  0x31   :  { %431 = shalt.err (!%p428_p9)
}
  0x32   :  { %52 = dma.hbm_to_vmem [thread:$0]  %s594_s3, 256, %s47_s28, [#allocation6], %s462_s13, %s462_s13, %s463_s14  }
  0x33   :  { %454 = dma.done.wait [#allocation3], 128  }
  0x34   :  { %455 = vsyncadd [#allocation3], 4294967168 }
  0x35   :  { %456 = dma.done.wait [#allocation6], 384  }
  0x36   :  { %457 = vsyncadd [#allocation6], 4294966912  ;;  %v465_v0 = vmov 0.0   ;;  %vm466_vm0 = vmmov 0   ;;  %v360_v1 = vld [vmem:[#allocation5] sm:$0xff]   ;;  %v361_v2 = vld [vmem:[#allocation2] sm:$0xff]   ;;  %v277_v27 = vlaneseq }
  0x37   :  { %328 = vmatprep.subr.bf16.mxu0 %v465_v0  ;;  %330 = vmatprep.mubr.msk.bf16.mxu0 %vm466_vm0, %v465_v0  ;;  %vm91_vm1 = vcmask 130048   ;;  %v362_v3 = vld [vmem:[#allocation7] sm:$0xff]   ;;  %v363_v4 = vld [vmem:[#allocation7 + $0x8] sm:$0xff]   ;;  %vm162_vm2 = vcmask 261120  }
  0x38   :  { %334 = vmatprep.subr.bf16.mxu1 %v465_v0  ;;  %338 = vmatprep.mubr.msk.bf16.mxu1 %vm466_vm0, %v465_v0  ;;  %v306_v5 = vld [vmem:[%s593_s2] ss:$0 sm:$0xff]  ;;  %v365_v16 = vld [vmem:[%s596_s5 + $0x8] sm:$0xff]   ;;  %v278_v29 = vand.u32 127, %v277_v27 }
  0x39   :  { %329 = vmatpush3.bf16.msra.mxu0 %v360_v1  ;;  %335 = vmatpush3.bf16.msra.mxu1 %v362_v3  ;;  %v364_v15 = vld [vmem:[%s596_s5] sm:$0xff]  }
  0x3a   :  { %342 = vmatprep.subr.bf16.mxu0 %v465_v0  ;;  %336 = vmatprep.subr.bf16.mxu1 %v465_v0  ;;  %v310_v17 = vld [vmem:[%s595_s4] ss:$0 sm:$0xff]  ;;  %vm279_vm3 = vcmp.lt.s32.totalorder %v278_v29, 4  ;;  %s467_s4 = smov [#allocation8]  }
  0x3b   :  { %v314_v28 = vld [vmem:[%s597_s6] ss:$0 sm:$0xff]  ;;  %s293_s5 = sshll.u32 %s467_s4, 4  ;;  %s294_s5 = int_to_ptr.vmem [resolvable:$true] %s293_s5 }
  0x3c   :  { %331 = vmatmul.mubr.msk.bf16.vlgmr.msra.gmra.mrb[0].mxu0 %vm91_vm1, %v361_v2  ;;  %s432_s22 = scalar_lea.vmem %s294_s5, 256  ;;  %p437_p11 = scmp.lt.s32.totalorder %s294_s5, %s294_s5 }
  0x3d   :  { %346 = vmatprep.mubr.msk.bf16.mxu0 %vm466_vm0, %v465_v0  ;;  %337 = vmatpush3.bf16.msra.mxu1 %v363_v4  ;;  %p433_p10 = scmp.ne.s32.totalorder %s294_s5, %s432_s22  ;;  %p438_p12 = scmp.lt.s32.totalorder %s432_s22, %s432_s22 }
  0x3e   :  { %343 = vmatpush3.bf16.msra.mxu0 %v364_v15 }
  0x3f   :  { %344 = vmatprep.subr.bf16.mxu0 %v465_v0  ;;  %p439_p13 = por %p438_p12, %p437_p11 }
  0x41   :  { %p440_p0 = pnand %p439_p13, %p433_p10 }
  0x42   :  { %345 = vmatpush3.bf16.msra.mxu0 %v365_v16 }
 0x10f   :  { %v129_v6 = vpop.f32.mrb[0].mxu0 }
 0x110   :  { %v130_v7 = vadd.f32 %v306_v5, %v129_v6  ;;  %v332_v8 = vpop.f32.mrb[1].mxu0 }
 0x111   :  { %v132_v9 = vpop.f32.mrb[2].mxu0 }
 0x112   :  { %v133_v10 = vadd.f32 %v306_v5, %v132_v9  ;;  %v333_v11 = vpop.f32.mrb[3].mxu0  ;;  %v136_v12 = vmax.f32 %v130_v7, 0.0 }
 0x114   :  { %v137_v13 = vmax.f32 %v133_v10, 0.0 }
 0x116   :  { %v138_v14 = vpack.c.bf16 %v137_v13, %v136_v12 }
 0x118   :  { %339 = vmatmul.mubr.msk.bf16.vlgmr.msra.gmra.mrb[0].mxu1 %vm162_vm2, %v138_v14 }
 0x1eb   :  { %v200_v18 = vpop.f32.mrb[0].mxu1 }
 0x1ec   :  { %v201_v19 = vadd.f32 %v310_v17, %v200_v18  ;;  %v340_v20 = vpop.f32.mrb[1].mxu1 }
 0x1ed   :  { %v203_v21 = vpop.f32.mrb[2].mxu1 }
 0x1ee   :  { %v204_v22 = vadd.f32 %v310_v17, %v203_v21  ;;  %v341_v23 = vpop.f32.mrb[3].mxu1  ;;  %v207_v24 = vmax.f32 %v201_v19, 0.0 }
 0x1f0   :  { %v208_v25 = vmax.f32 %v204_v22, 0.0 }
 0x1f2   :  { %v209_v26 = vpack.c.bf16 %v208_v25, %v207_v24 }
 0x1f4   :  { %347 = vmatmul.mubr.msk.bf16.vlgmr.msra.gmra.mrb[4].mxu0 %vm162_vm2, %v209_v26 }
 0x2c7   :  { %v270_v30 = vpop.f32.mrb[4].mxu0 }
 0x2c8   :  { %v271_v31 = vadd.f32 %v314_v28, %v270_v30  ;;  %v348_v32 = vpop.f32.mrb[5].mxu0 }
 0x2c9   :  { %v273_v33 = vpop.f32.mrb[6].mxu0 }
 0x2ca   :  { %v318_v34 = vclamps-f32 %v271_v31, 2.0  ;;  %v274_v35 = vadd.f32 %v314_v28, %v273_v33  ;;  %v349_v36 = vpop.f32.mrb[7].mxu0 }
 0x2cc   :  { %v284_v37 = vsel %vm279_vm3, %v271_v31, %v318_v34  ;;  %v319_v38 = vclamps-f32 %v274_v35, 2.0 }
 0x2cd   :  { %286 = vst [vmem:[#allocation8] sm:$0xff] %v284_v37 }
 0x2ce   :  { %v285_v39 = vsel %vm279_vm3, %v274_v35, %v319_v38 }
 0x2cf   :  { %287 = vst [vmem:[#allocation8 + $0x8] sm:$0xff] %v285_v39 }
 0x2d0   :  { %443 = shalt.err (!%p440_p0)
}
 0x2d1   :  { %s444_s24 = scalar_lea.hbm %s598_s7, 256 }
 0x2d2   :  { %p445_p1 = scmp.ne.s32.totalorder %s598_s7, %s444_s24  ;;  %p448_p2 = scmp.lt.u32.totalorder %s444_s24, %s598_s7 }
 0x2d4   :  { %p450_p3 = pnand %p448_p2, %p445_p1 }
 0x2d6   :  { %453 = shalt.err (!%p450_p3)
}
 0x2d7   :  { %s468_s29 = smov 128   ;;  %s469_s30 = smov 8  }
 0x2d8   :  { %299 = dma.vmem_to_hbm [thread:$0]  %s294_s5, 256, %s598_s7, [#allocation4], %s468_s29, %s468_s29, %s469_s30  }
 0x2d9   :  { %458 = dma.done.wait [#allocation4], 256  }
 0x2da   :  { %459 = vsyncadd [#allocation4], 4294967040 }
 0x2db   :  { %303 = vsyncpa [#allocation3], 1 }
 0x2dc   :  { %304 = vsyncpa [#allocation6], 1 }
 0x2dd   :  { %305 = vsyncpa [#allocation4], 1 }

</bundles_post_ra>
